<compile_context>
chip_gen: v6e
topology: v6e:2x2x1
jax: 0.10.0
libtpu: 0.0.40
codegen_flags: <defaults>
</compile_context>

<pallas_src>
import jax
import jax.numpy as jnp
from jax.experimental import pallas as pl
from jax.experimental.pallas import tpu as pltpu

_LANE = 128
_DEFAULT_TILE_B = 512  # sweep 512 / 1024 / 2048 for large batches; <2 MB per buffer


def _round_up(x, m):
    return ((x + m - 1) // m) * m


def mlp_kernel(x_ref, w1_ref, b1_ref, w2_ref, b2_ref, w3_ref, b3_ref, o_ref):
    # fc1 + ReLU: MXU matmul (bf16 in, f32 accumulate); bias add / ReLU in f32 on the VPU.
    h1 = jnp.dot(x_ref[...], w1_ref[...], preferred_element_type=jnp.float32)
    h1 = jnp.maximum(h1 + b1_ref[...], 0.0)
    # fc2 + ReLU (N padded to 128 lanes; zero columns stay exactly zero through ReLU).
    h2 = jnp.dot(h1.astype(w2_ref.dtype), w2_ref[...], preferred_element_type=jnp.float32)
    h2 = jnp.maximum(h2 + b2_ref[...], 0.0)
    # fc3 (no activation), lane-dense 128-wide output; real columns sliced in the wrapper.
    out = jnp.dot(h2.astype(w3_ref.dtype), w3_ref[...], preferred_element_type=jnp.float32)
    o_ref[...] = (out + b3_ref[...]).astype(o_ref.dtype)


def binary_classifier_forward(x, params, *, tile_b=_DEFAULT_TILE_B,
                              compute_dtype=jnp.bfloat16):
    """x: [B, input_size] float32. params: dict of w1,b1,w2,b2,w3,b3 (W stored [in, out])."""
    w1, b1 = params["w1"], params["b1"]
    w2, b2 = params["w2"], params["b2"]
    w3, b3 = params["w3"], params["b3"]

    B, input_size = x.shape
    h2_size = w2.shape[1]
    out_size = w3.shape[1]

    # --- Lane-dense zero padding of the narrow dims (exact through ReLU / matmul). ---
    h2_pad = _round_up(h2_size, _LANE)
    out_pad = _round_up(out_size, _LANE)
    w2p = jnp.pad(w2, ((0, 0), (0, h2_pad - h2_size)))
    b2p = jnp.pad(b2, ((0, 0), (0, h2_pad - h2_size)))
    w3p = jnp.pad(w3, ((0, h2_pad - h2_size), (0, out_pad - out_size)))
    b3p = jnp.pad(b3, ((0, 0), (0, out_pad - out_size)))

    # --- Batch tiling: large aligned tiles, batch zero-padded to a tile multiple. ---
    tile_b = min(tile_b, _round_up(B, _LANE))
    b_pad = _round_up(B, tile_b)
    xp = jnp.pad(x, ((0, b_pad - B), (0, 0)))

    # --- bf16 MXU inputs, f32 biases (VPU-side math stays f32). ---
    xp = xp.astype(compute_dtype)
    w1c = w1.astype(compute_dtype)
    w2c = w2p.astype(compute_dtype)
    w3c = w3p.astype(compute_dtype)
    b1c = b1.astype(jnp.float32)
    b2c = b2p.astype(jnp.float32)
    b3c = b3p.astype(jnp.float32)

    def resident(shape):
        # Constant block index across the batch grid -> stays VMEM-resident.
        return pl.BlockSpec(shape, lambda i: (0, 0))

    out_padded = pl.pallas_call(
        mlp_kernel,
        out_shape=jax.ShapeDtypeStruct((b_pad, out_pad), jnp.float32),
        grid_spec=pltpu.PrefetchScalarGridSpec(
            num_scalar_prefetch=0,
            grid=(b_pad // tile_b,),
            in_specs=[
                pl.BlockSpec((tile_b, input_size), lambda i: (i, 0)),  # x: tiled over batch
                resident(w1c.shape), resident(b1c.shape),
                resident(w2c.shape), resident(b2c.shape),
                resident(w3c.shape), resident(b3c.shape),
            ],
            out_specs=pl.BlockSpec((tile_b, out_pad), lambda i: (i, 0)),
        ),
        compiler_params=pltpu.CompilerParams(
            dimension_semantics=("parallel",),  # shards batch tiles across v7x's 2 TCs
        ),
    )(xp, w1c, b1c, w2c, b2c, w3c, b3c)

    return out_padded[:B, :out_size]


def init_params(key, input_size, output_size):
    """Deterministic synthetic parameters (PyTorch-style uniform fan-in init)."""
    ks = jax.random.split(key, 6)

    def linear(kw, kb, fan_in, fan_out):
        bound = 1.0 / jnp.sqrt(float(fan_in))
        w = jax.random.uniform(kw, (fan_in, fan_out), jnp.float32, -bound, bound)
        b = jax.random.uniform(kb, (1, fan_out), jnp.float32, -bound, bound)
        return w, b

    w1, b1 = linear(ks[0], ks[1], input_size, 128)
    w2, b2 = linear(ks[2], ks[3], 128, 64)
    w3, b3 = linear(ks[4], ks[5], 64, output_size)
    return {"w1": w1, "b1": b1, "w2": w2, "b2": b2, "w3": w3, "b3": b3}


if __name__ == "__main__":
    # NOTE: at this tiny shape the kernel is pure launch overhead (per perf review);
    # the tiling / pipelining wins only show up at batch sizes in the thousands.
    input_size = 32
    output_size = 2
    batch = 8

    key = jax.random.PRNGKey(0)
    k_params, k_x = jax.random.split(key)
    params = init_params(k_params, input_size, output_size)
    x = jax.random.normal(k_x, (batch, input_size), dtype=jnp.float32)

    out = binary_classifier_forward(x, params)
    out = jax.block_until_ready(out)

    # reference check in plain JAX (f32); bf16 MXU inputs -> loose tolerance
    h1 = jnp.maximum(x @ params["w1"] + params["b1"], 0.0)
    h2 = jnp.maximum(h1 @ params["w2"] + params["b2"], 0.0)
    ref = h2 @ params["w3"] + params["b3"]
    assert out.shape == (batch, output_size)
    assert jnp.allclose(out, ref, atol=5e-2, rtol=5e-2), jnp.max(jnp.abs(out - ref))

    # exact-path sanity check in pure f32 as well
    out_f32 = jax.block_until_ready(
        binary_classifier_forward(x, params, compute_dtype=jnp.float32))
    assert jnp.allclose(out_f32, ref, atol=1e-5, rtol=1e-5)

    print("KERNEL_OK")
</pallas_src>

<mosaic_0001>
module attributes {stable_mosaic.version = 11 : i64} {
  func.func @mlp_kernel(%arg0: i32, %arg1: memref<128x32xbf16, #tpu.memory_space<vmem>>, %arg2: memref<32x128xbf16, #tpu.memory_space<vmem>>, %arg3: memref<1x128xf32, #tpu.memory_space<vmem>>, %arg4: memref<128x128xbf16, #tpu.memory_space<vmem>>, %arg5: memref<1x128xf32, #tpu.memory_space<vmem>>, %arg6: memref<128x128xbf16, #tpu.memory_space<vmem>>, %arg7: memref<1x128xf32, #tpu.memory_space<vmem>>, %arg8: memref<128x128xf32, #tpu.memory_space<vmem>>) attributes {dimension_semantics = [#tpu.dimension_semantics<parallel>], iteration_bounds = array<i64: 1>, scalar_prefetch = 0 : i64, scratch_operands = 0 : i64, tpu.core_type = #tpu.core_type<tc>, window_params = [{transform_indices = @transform_0, window_bounds = array<i64: 128, 32>}, {pipeline_mode = #tpu.pipeline_mode<synchronous>, transform_indices = @transform_1, window_bounds = array<i64: 32, 128>}, {pipeline_mode = #tpu.pipeline_mode<synchronous>, transform_indices = @transform_2, window_bounds = array<i64: 1, 128>}, {pipeline_mode = #tpu.pipeline_mode<synchronous>, transform_indices = @transform_3, window_bounds = array<i64: 128, 128>}, {pipeline_mode = #tpu.pipeline_mode<synchronous>, transform_indices = @transform_4, window_bounds = array<i64: 1, 128>}, {pipeline_mode = #tpu.pipeline_mode<synchronous>, transform_indices = @transform_5, window_bounds = array<i64: 128, 128>}, {pipeline_mode = #tpu.pipeline_mode<synchronous>, transform_indices = @transform_6, window_bounds = array<i64: 1, 128>}, {transform_indices = @transform_7, window_bounds = array<i64: 128, 128>}]} {
    %c0 = arith.constant 0 : index
    %c0_0 = arith.constant 0 : index
    %0 = vector.load %arg1[%c0, %c0_0] : memref<128x32xbf16, #tpu.memory_space<vmem>>, vector<128x32xbf16>
    %c0_1 = arith.constant 0 : index
    %c0_2 = arith.constant 0 : index
    %1 = vector.load %arg2[%c0_1, %c0_2] : memref<32x128xbf16, #tpu.memory_space<vmem>>, vector<32x128xbf16>
    %cst = arith.constant dense<0.000000e+00> : vector<128x128xf32>
    %2 = tpu.matmul %0, %1, %cst {dimension_numbers = #tpu.dot_dimension_numbers<[1], [0], [0], [1], [0, 0, 1, 1], [], []>} : vector<128x32xbf16>, vector<32x128xbf16>, vector<128x128xf32> -> vector<128x128xf32>
    %c0_3 = arith.constant 0 : index
    %c0_4 = arith.constant 0 : index
    %3 = vector.load %arg3[%c0_3, %c0_4] : memref<1x128xf32, #tpu.memory_space<vmem>>, vector<1x128xf32>
    %4 = vector.broadcast %3 : vector<1x128xf32> to vector<128x128xf32>
    %5 = arith.addf %2, %4 : vector<128x128xf32>
    %cst_5 = arith.constant 0.000000e+00 : f32
    %6 = vector.broadcast %cst_5 : f32 to vector<128x128xf32>
    %7 = arith.maximumf %5, %6 : vector<128x128xf32>
    %8 = arith.truncf %7 : vector<128x128xf32> to vector<128x128xbf16>
    %c0_6 = arith.constant 0 : index
    %c0_7 = arith.constant 0 : index
    %9 = vector.load %arg4[%c0_6, %c0_7] : memref<128x128xbf16, #tpu.memory_space<vmem>>, vector<128x128xbf16>
    %cst_8 = arith.constant dense<0.000000e+00> : vector<128x128xf32>
    %10 = tpu.matmul %8, %9, %cst_8 {dimension_numbers = #tpu.dot_dimension_numbers<[1], [0], [0], [1], [0, 0, 1, 1], [], []>} : vector<128x128xbf16>, vector<128x128xbf16>, vector<128x128xf32> -> vector<128x128xf32>
    %c0_9 = arith.constant 0 : index
    %c0_10 = arith.constant 0 : index
    %11 = vector.load %arg5[%c0_9, %c0_10] : memref<1x128xf32, #tpu.memory_space<vmem>>, vector<1x128xf32>
    %12 = vector.broadcast %11 : vector<1x128xf32> to vector<128x128xf32>
    %13 = arith.addf %10, %12 : vector<128x128xf32>
    %cst_11 = arith.constant 0.000000e+00 : f32
    %14 = vector.broadcast %cst_11 : f32 to vector<128x128xf32>
    %15 = arith.maximumf %13, %14 : vector<128x128xf32>
    %16 = arith.truncf %15 : vector<128x128xf32> to vector<128x128xbf16>
    %c0_12 = arith.constant 0 : index
    %c0_13 = arith.constant 0 : index
    %17 = vector.load %arg6[%c0_12, %c0_13] : memref<128x128xbf16, #tpu.memory_space<vmem>>, vector<128x128xbf16>
    %cst_14 = arith.constant dense<0.000000e+00> : vector<128x128xf32>
    %18 = tpu.matmul %16, %17, %cst_14 {dimension_numbers = #tpu.dot_dimension_numbers<[1], [0], [0], [1], [0, 0, 1, 1], [], []>} : vector<128x128xbf16>, vector<128x128xbf16>, vector<128x128xf32> -> vector<128x128xf32>
    %c0_15 = arith.constant 0 : index
    %c0_16 = arith.constant 0 : index
    %19 = vector.load %arg7[%c0_15, %c0_16] : memref<1x128xf32, #tpu.memory_space<vmem>>, vector<1x128xf32>
    %20 = vector.broadcast %19 : vector<1x128xf32> to vector<128x128xf32>
    %21 = arith.addf %18, %20 : vector<128x128xf32>
    %c0_17 = arith.constant 0 : index
    %c0_18 = arith.constant 0 : index
    %22 = vector.load %arg8[%c0_17, %c0_18] : memref<128x128xf32, #tpu.memory_space<vmem>>, vector<128x128xf32>
    tpu.vector_store %arg8[%c0_17, %c0_18], %21 {strides = array<i32>} : memref<128x128xf32, #tpu.memory_space<vmem>>, vector<128x128xf32>,
    return
  }
  func.func @transform_0(%arg0: i32) -> (i32, i32) {
    %c0_i32 = arith.constant 0 : i32
    %c0_i32_0 = arith.constant 0 : i32
    return %arg0, %c0_i32 : i32, i32
  }
  func.func @transform_1(%arg0: i32) -> (i32, i32) {
    %c0_i32 = arith.constant 0 : i32
    %c0_i32_0 = arith.constant 0 : i32
    %c0_i32_1 = arith.constant 0 : i32
    return %c0_i32, %c0_i32_0 : i32, i32
  }
  func.func @transform_2(%arg0: i32) -> (i32, i32) {
    %c0_i32 = arith.constant 0 : i32
    %c0_i32_0 = arith.constant 0 : i32
    %c0_i32_1 = arith.constant 0 : i32
    return %c0_i32, %c0_i32_0 : i32, i32
  }
  func.func @transform_3(%arg0: i32) -> (i32, i32) {
    %c0_i32 = arith.constant 0 : i32
    %c0_i32_0 = arith.constant 0 : i32
    %c0_i32_1 = arith.constant 0 : i32
    return %c0_i32, %c0_i32_0 : i32, i32
  }
  func.func @transform_4(%arg0: i32) -> (i32, i32) {
    %c0_i32 = arith.constant 0 : i32
    %c0_i32_0 = arith.constant 0 : i32
    %c0_i32_1 = arith.constant 0 : i32
    return %c0_i32, %c0_i32_0 : i32, i32
  }
  func.func @transform_5(%arg0: i32) -> (i32, i32) {
    %c0_i32 = arith.constant 0 : i32
    %c0_i32_0 = arith.constant 0 : i32
    %c0_i32_1 = arith.constant 0 : i32
    return %c0_i32, %c0_i32_0 : i32, i32
  }
  func.func @transform_6(%arg0: i32) -> (i32, i32) {
    %c0_i32 = arith.constant 0 : i32
    %c0_i32_0 = arith.constant 0 : i32
    %c0_i32_1 = arith.constant 0 : i32
    return %c0_i32, %c0_i32_0 : i32, i32
  }
  func.func @transform_7(%arg0: i32) -> (i32, i32) {
    %c0_i32 = arith.constant 0 : i32
    %c0_i32_0 = arith.constant 0 : i32
    return %arg0, %c0_i32 : i32, i32
  }
}

</mosaic_0001>

<bundles_post_ra>
// kernel: tpu_custom_call.1
= control target key start
LH: loop header
LB: loop body
LE: loop exit
PB: predicated region body
PF: predicated region fallthrough
CT: control target
= control target key end

     0   :  { %12 = vsyncpa [#allocation3], 0  ;;  %s1022_s0 = inlined_call_operand.vmem [shape: bf16[128,32], index: 0, kind: input, shape index: {}]   ;;  %s1023_s1 = inlined_call_operand.vmem [shape: bf16[32,128], index: 1, kind: input, shape index: {}]   ;;  %s1024_s2 = inlined_call_operand.vmem [shape: f32[1,128], index: 2, kind: input, shape index: {}]   ;;  %s1025_s3 = inlined_call_operand.vmem [shape: bf16[128,128], index: 3, kind: input, shape index: {}]   ;;  %s1026_s4 = inlined_call_operand.vmem [shape: f32[1,128], index: 4, kind: input, shape index: {}]   ;;  %s1027_s5 = inlined_call_operand.hbm [shape: bf16[128,128], index: 5, kind: input, shape index: {}]   ;;  %s1028_s6 = inlined_call_operand.vmem [shape: f32[1,128], index: 6, kind: input, shape index: {}]   ;;  %s1029_s7 = inlined_call_operand.hbm [shape: f32[128,128], index: 7, kind: output, shape index: {}]  }
   0x1   :  { %13 = vsyncpa [#allocation4], 0  ;;  %s899_s24 = smov [#allocation2]  }
   0x2   :  { %s29_s25 = sshll.u32 %s899_s24, 4  ;;  %s30_s25 = int_to_ptr.vmem [resolvable:$true] %s29_s25 }
   0x3   :  { %s863_s26 = scalar_lea.vmem %s30_s25, 1024  ;;  %p868_p1 = scmp.lt.s32.totalorder %s30_s25, %s30_s25 }
   0x4   :  { %p864_p0 = scmp.ne.s32.totalorder %s30_s25, %s863_s26  ;;  %p869_p2 = scmp.lt.s32.totalorder %s863_s26, %s863_s26 }
   0x6   :  { %p870_p3 = por %p869_p2, %p868_p1 }
   0x8   :  { %p871_p4 = pnand %p870_p3, %p864_p0 }
   0xa   :  { %874 = shalt.err (!%p871_p4)
}
   0xb   :  { %s900_s27 = smov 64   ;;  %s901_s28 = smov 4  }
   0xc   :  { %35 = dma.hbm_to_vmem [thread:$0]  %s1027_s5, 1024, %s30_s25, [#allocation3], %s900_s27, %s900_s27, %s901_s28  }
   0xd   :  { %895 = dma.done.wait [#allocation3], 1024  }
   0xe   :  { %896 = vsyncadd [#allocation3], 4294966272  ;;  %v829_v0 = vld [vmem:[%s1023_s1 + $0x8] sm:$0xff]   ;;  %v830_v1 = vld [vmem:[%s1023_s1] sm:$0xff]   ;;  %vm121_vm0 = vcmask 261120  }
   0xf   :  { %739 = vmatprep.subr.bf16.mxu0 %v829_v0  ;;  %v831_v2 = vld [vmem:[%s1022_s0] sm:$0xff]   ;;  %v832_v3 = vld [vmem:[%s1022_s0 + $0x8] sm:$0xff]   ;;  %v833_v4 = vld [vmem:[%s1022_s0 + $0x10] sm:$0xff]  }
  0x10   :  { %740 = vmatpush3.bf16.msra.mxu0 %v829_v0  ;;  %743 = vmatprep.mubr.msk.bf16.mxu0 %vm121_vm0, %v831_v2  ;;  %v839_v5 = vld [vmem:[%s1025_s3 + $0x38] sm:$0xff]   ;;  %v840_v6 = vld [vmem:[%s1025_s3 + $0x30] sm:$0xff]   ;;  %v835_v8 = vld [vmem:[%s1022_s0 + $0x20] sm:$0xff]  }
  0x11   :  { %741 = vmatprep.subr.bf16.mxu0 %v830_v1  ;;  %v834_v7 = vld [vmem:[%s1022_s0 + $0x18] sm:$0xff]   ;;  %759 = vmatprep.subr.bf16.mxu1 %v839_v5  ;;  %v841_v9 = vld [vmem:[%s1025_s3 + $0x28] sm:$0xff]   ;;  %v842_v10 = vld [vmem:[%s1025_s3 + $0x20] sm:$0xff]  }
  0x12   :  { %760 = vmatpush3.bf16.msra.mxu1 %v839_v5  ;;  %v836_v11 = vld [vmem:[%s1022_s0 + $0x28] sm:$0xff]   ;;  %v843_v12 = vld [vmem:[%s1025_s3 + $0x18] sm:$0xff]   ;;  %v837_v13 = vld [vmem:[%s1022_s0 + $0x30] sm:$0xff]  }
  0x13   :  { %761 = vmatprep.subr.bf16.mxu1 %v840_v6  ;;  %v838_v14 = vld [vmem:[%s1022_s0 + $0x38] sm:$0xff]   ;;  %v844_v15 = vld [vmem:[%s1025_s3 + $0x10] sm:$0xff]   ;;  %v845_v16 = vld [vmem:[%s1025_s3 + $0x8] sm:$0xff]  }
  0x14   :  { %742 = vmatpush3.bf16.msra.mxu0 %v830_v1  ;;  %v846_v17 = vld [vmem:[%s1025_s3] sm:$0xff]   ;;  %v847_v18 = vld [vmem:[#allocation2 + $0x38] sm:$0xff]   ;;  %v848_v19 = vld [vmem:[#allocation2 + $0x30] sm:$0xff]  }
  0x15   :  { %791 = vmatprep.subr.bf16.mxu0 %v847_v18  ;;  %v849_v20 = vld [vmem:[#allocation2 + $0x28] sm:$0xff]   ;;  %v850_v21 = vld [vmem:[#allocation2 + $0x20] sm:$0xff]   ;;  %v851_v22 = vld [vmem:[#allocation2 + $0x18] sm:$0xff]  }
  0x16   :  { %762 = vmatpush3.bf16.msra.mxu1 %v840_v6  ;;  %v660_v25 = vld [vmem:[%s1024_s2] ss:$0 sm:$0xff] }
  0x17   :  { %744 = vmatmul.mubr.msk.bf16.vlgmr.msra.gmra.mxu0 %vm121_vm0, %v832_v3  ;;  %763 = vmatprep.subr.bf16.mxu1 %v841_v9 }
  0x18   :  { %747 = vmatprep.mubr.msk.bf16.mxu0 %vm121_vm0, %v833_v4  ;;  %792 = vmatpush3.bf16.msra.mxu0 %v847_v18  ;;  %v854_v18 = vld [vmem:[#allocation2] sm:$0xff]  }
  0x19   :  { %793 = vmatprep.subr.bf16.mxu0 %v848_v19 }
  0x1a   :  { %764 = vmatpush3.bf16.msra.mxu1 %v841_v9 }
  0x1b   :  { %765 = vmatprep.subr.bf16.mxu1 %v842_v10 }
  0x1c   :  { %794 = vmatpush3.bf16.msra.mxu0 %v848_v19 }
  0x1d   :  { %795 = vmatprep.subr.bf16.mxu0 %v849_v20 }
  0x1e   :  { %766 = vmatpush3.bf16.msra.mxu1 %v842_v10 }
  0x1f   :  { %748 = vmatmul.mubr.msk.bf16.gmra.mxu0 %vm121_vm0, %v834_v7  ;;  %767 = vmatprep.subr.bf16.mxu1 %v843_v12 }
  0x20   :  { %751 = vmatprep.mubr.msk.bf16.mxu0 %vm121_vm0, %v835_v8  ;;  %796 = vmatpush3.bf16.msra.mxu0 %v849_v20 }
  0x21   :  { %797 = vmatprep.subr.bf16.mxu0 %v850_v21 }
  0x22   :  { %768 = vmatpush3.bf16.msra.mxu1 %v843_v12 }
  0x23   :  { %769 = vmatprep.subr.bf16.mxu1 %v844_v15 }
  0x24   :  { %798 = vmatpush3.bf16.msra.mxu0 %v850_v21  ;;  %v679_v21 = vld [vmem:[%s1026_s4] ss:$0 sm:$0xff] }
  0x25   :  { %799 = vmatprep.subr.bf16.mxu0 %v851_v22 }
  0x26   :  { %770 = vmatpush3.bf16.msra.mxu1 %v844_v15 }
  0x27   :  { %752 = vmatmul.mubr.msk.bf16.gmra.mxu0 %vm121_vm0, %v836_v11  ;;  %771 = vmatprep.subr.bf16.mxu1 %v845_v16 }
  0x28   :  { %755 = vmatprep.mubr.msk.bf16.mxu0 %vm121_vm0, %v837_v13  ;;  %800 = vmatpush3.bf16.msra.mxu0 %v851_v22 }
  0x2a   :  { %772 = vmatpush3.bf16.msra.mxu1 %v845_v16  ;;  %v852_v16 = vld [vmem:[#allocation2 + $0x10] sm:$0xff]  }
  0x2b   :  { %773 = vmatprep.subr.bf16.mxu1 %v846_v17  ;;  %801 = vmatprep.subr.bf16.mxu0 %v852_v16 }
  0x2c   :  { %802 = vmatpush3.bf16.msra.mxu0 %v852_v16 }
  0x2e   :  { %774 = vmatpush3.bf16.msra.mxu1 %v846_v17  ;;  %v853_v17 = vld [vmem:[#allocation2 + $0x8] sm:$0xff]  }
  0x2f   :  { %756 = vmatmul.mubr.msk.bf16.gmra.mxu0 %vm121_vm0, %v838_v14  ;;  %803 = vmatprep.subr.bf16.mxu0 %v853_v17 }
  0x30   :  { %804 = vmatpush3.bf16.msra.mxu0 %v853_v17 }
  0x31   :  { %805 = vmatprep.subr.bf16.mxu0 %v854_v18 }
  0x34   :  { %806 = vmatpush3.bf16.msra.mxu0 %v854_v18 }
  0xd7   :  { %v745_v23 = vpop.f32.mrf.mxu0 }
  0xd8   :  { %v189_v29 = vadd.f32 %v745_v23, %v660_v25 }
  0xd9   :  { %v180_v24 = vpop.f32.mrf.mxu0 }
  0xda   :  { %v181_v27 = vadd.f32 %v660_v25, %v180_v24  ;;  %v245_v36 = vmax.f32 %v189_v29, 0.0 }
  0xdb   :  { %v746_v26 = vpop.f32.mrf.mxu0 }
  0xdc   :  { %v192_v28 = vadd.f32 %v746_v26, %v660_v25  ;;  %v243_v34 = vmax.f32 %v181_v27, 0.0 }
  0xdd   :  { %v183_v30 = vpop.f32.mrf.mxu0 }
  0xde   :  { %v184_v31 = vadd.f32 %v660_v25, %v183_v30  ;;  %v246_v32 = vmax.f32 %v192_v28, 0.0 }
  0xdf   :  { %v749_v33 = vpop.f32.mrf.mxu0 }
  0xe0   :  { %v244_v35 = vmax.f32 %v184_v31, 0.0  ;;  %v260_v39 = vpack.c.bf16 %v246_v32, %v245_v36  ;;  %v205_v43 = vadd.f32 %v749_v33, %v660_v25 }
  0xe1   :  { %v196_v37 = vpop.f32.mrf.mxu0 }
  0xe2   :  { %v259_v38 = vpack.c.bf16 %v244_v35, %v243_v34  ;;  %v197_v41 = vadd.f32 %v660_v25, %v196_v37  ;;  %v249_v50 = vmax.f32 %v205_v43, 0.0 }
  0xe3   :  { %v750_v40 = vpop.f32.mrf.mxu0 }
  0xe4   :  { %v208_v42 = vadd.f32 %v750_v40, %v660_v25  ;;  %775 = vmatprep.mubr.bf16.mxu1 %v259_v38  ;;  %v247_v48 = vmax.f32 %v197_v41, 0.0 }
  0xe5   :  { %v199_v44 = vpop.f32.mrf.mxu0  ;;  %776 = vmatmul.mubr.bf16.vlgmr.msra.gmra.mxu1 %v260_v39 }
  0xe6   :  { %v200_v45 = vadd.f32 %v660_v25, %v199_v44  ;;  %v250_v46 = vmax.f32 %v208_v42, 0.0 }
  0xe7   :  { %v753_v47 = vpop.f32.mrf.mxu0 }
  0xe8   :  { %v248_v49 = vmax.f32 %v200_v45, 0.0  ;;  %v262_v53 = vpack.c.bf16 %v250_v46, %v249_v50  ;;  %v221_v57 = vadd.f32 %v753_v47, %v660_v25 }
  0xe9   :  { %v212_v51 = vpop.f32.mrf.mxu0 }
  0xea   :  { %v261_v52 = vpack.c.bf16 %v248_v49, %v247_v48  ;;  %v213_v55 = vadd.f32 %v660_v25, %v212_v51  ;;  %v253_v0 = vmax.f32 %v221_v57, 0.0 }
  0xeb   :  { %v754_v54 = vpop.f32.mrf.mxu0 }
  0xec   :  { %v224_v56 = vadd.f32 %v754_v54, %v660_v25  ;;  %779 = vmatprep.mubr.bf16.mxu1 %v261_v52  ;;  %v251_v62 = vmax.f32 %v213_v55, 0.0 }
  0xed   :  { %v215_v58 = vpop.f32.mrf.mxu0  ;;  %780 = vmatmul.mubr.bf16.gmra.mxu1 %v262_v53 }
  0xee   :  { %v216_v59 = vadd.f32 %v660_v25, %v215_v58  ;;  %v254_v60 = vmax.f32 %v224_v56, 0.0 }
  0xef   :  { %v757_v61 = vpop.f32.mrf.mxu0 }
  0xf0   :  { %v252_v63 = vmax.f32 %v216_v59, 0.0  ;;  %v264_v3 = vpack.c.bf16 %v254_v60, %v253_v0  ;;  %v237_v7 = vadd.f32 %v757_v61, %v660_v25 }
  0xf1   :  { %v228_v1 = vpop.f32.mrf.mxu0 }
  0xf2   :  { %v263_v2 = vpack.c.bf16 %v252_v63, %v251_v62  ;;  %v229_v5 = vadd.f32 %v660_v25, %v228_v1  ;;  %v257_v13 = vmax.f32 %v237_v7, 0.0 }
  0xf3   :  { %v758_v4 = vpop.f32.mrf.mxu0 }
  0xf4   :  { %v240_v6 = vadd.f32 %v758_v4, %v660_v25  ;;  %783 = vmatprep.mubr.bf16.mxu1 %v263_v2  ;;  %v255_v11 = vmax.f32 %v229_v5, 0.0 }
  0xf5   :  { %v231_v8 = vpop.f32.mrf.mxu0  ;;  %784 = vmatmul.mubr.bf16.gmra.mxu1 %v264_v3 }
  0xf6   :  { %v232_v9 = vadd.f32 %v660_v25, %v231_v8  ;;  %v258_v10 = vmax.f32 %v240_v6, 0.0 }
  0xf8   :  { %v256_v12 = vmax.f32 %v232_v9, 0.0  ;;  %v266_v15 = vpack.c.bf16 %v258_v10, %v257_v13 }
  0xfa   :  { %v265_v14 = vpack.c.bf16 %v256_v12, %v255_v11  ;;  %v688_v12 = vld [vmem:[%s1028_s6] ss:$0 sm:$0xff]  ;;  %s902_s6 = smov [#allocation5]  }
  0xfb   :  { %s648_s19 = sshll.u32 %s902_s6, 4  ;;  %s649_s19 = int_to_ptr.vmem [resolvable:$true] %s648_s19 }
  0xfc   :  { %787 = vmatprep.mubr.bf16.mxu1 %v265_v14  ;;  %s875_s20 = scalar_lea.vmem %s649_s19, 2048  ;;  %p880_p6 = scmp.lt.s32.totalorder %s649_s19, %s649_s19 }
  0xfd   :  { %788 = vmatmul.mubr.bf16.gmra.mxu1 %v266_v15  ;;  %p876_p5 = scmp.ne.s32.totalorder %s649_s19, %s875_s20  ;;  %p881_p7 = scmp.lt.s32.totalorder %s875_s20, %s875_s20 }
  0xff   :  { %p882_p8 = por %p881_p7, %p880_p6 }
 0x101   :  { %p883_p9 = pnand %p882_p8, %p876_p5 }
 0x1a5   :  { %v777_v19 = vpop.f32.mrf.mxu1 }
 0x1a6   :  { %v381_v25 = vadd.f32 %v777_v19, %v679_v21 }
 0x1a7   :  { %v372_v20 = vpop.f32.mrf.mxu1 }
 0x1a8   :  { %v373_v23 = vadd.f32 %v679_v21, %v372_v20  ;;  %v437_v32 = vmax.f32 %v381_v25, 0.0 }
 0x1a9   :  { %v778_v22 = vpop.f32.mrf.mxu1 }
 0x1aa   :  { %v384_v24 = vadd.f32 %v778_v22, %v679_v21  ;;  %v435_v30 = vmax.f32 %v373_v23, 0.0 }
 0x1ab   :  { %v375_v26 = vpop.f32.mrf.mxu1 }
 0x1ac   :  { %v376_v27 = vadd.f32 %v679_v21, %v375_v26  ;;  %v438_v28 = vmax.f32 %v384_v24, 0.0 }
 0x1ad   :  { %v781_v29 = vpop.f32.mrf.mxu1 }
 0x1ae   :  { %v436_v31 = vmax.f32 %v376_v27, 0.0  ;;  %v452_v35 = vpack.c.bf16 %v438_v28, %v437_v32  ;;  %v397_v39 = vadd.f32 %v781_v29, %v679_v21 }
 0x1af   :  { %v388_v33 = vpop.f32.mrf.mxu1 }
 0x1b0   :  { %v451_v34 = vpack.c.bf16 %v436_v31, %v435_v30  ;;  %v389_v37 = vadd.f32 %v679_v21, %v388_v33  ;;  %v441_v46 = vmax.f32 %v397_v39, 0.0 }
 0x1b1   :  { %v782_v36 = vpop.f32.mrf.mxu1 }
 0x1b2   :  { %v400_v38 = vadd.f32 %v782_v36, %v679_v21  ;;  %807 = vmatprep.mubr.bf16.mxu0 %v451_v34  ;;  %v439_v44 = vmax.f32 %v389_v37, 0.0 }
 0x1b3   :  { %v391_v40 = vpop.f32.mrf.mxu1  ;;  %808 = vmatmul.mubr.bf16.vlgmr.msra.gmra.mxu0 %v452_v35 }
 0x1b4   :  { %v392_v41 = vadd.f32 %v679_v21, %v391_v40  ;;  %v442_v42 = vmax.f32 %v400_v38, 0.0 }
 0x1b5   :  { %v785_v43 = vpop.f32.mrf.mxu1 }
 0x1b6   :  { %v440_v45 = vmax.f32 %v392_v41, 0.0  ;;  %v454_v49 = vpack.c.bf16 %v442_v42, %v441_v46  ;;  %v413_v53 = vadd.f32 %v785_v43, %v679_v21 }
 0x1b7   :  { %v404_v47 = vpop.f32.mrf.mxu1 }
 0x1b8   :  { %v453_v48 = vpack.c.bf16 %v440_v45, %v439_v44  ;;  %v405_v51 = vadd.f32 %v679_v21, %v404_v47  ;;  %v445_v60 = vmax.f32 %v413_v53, 0.0 }
 0x1b9   :  { %v786_v50 = vpop.f32.mrf.mxu1 }
 0x1ba   :  { %v416_v52 = vadd.f32 %v786_v50, %v679_v21  ;;  %811 = vmatprep.mubr.bf16.mxu0 %v453_v48  ;;  %v443_v58 = vmax.f32 %v405_v51, 0.0 }
 0x1bb   :  { %v407_v54 = vpop.f32.mrf.mxu1  ;;  %812 = vmatmul.mubr.bf16.gmra.mxu0 %v454_v49 }
 0x1bc   :  { %v408_v55 = vadd.f32 %v679_v21, %v407_v54  ;;  %v446_v56 = vmax.f32 %v416_v52, 0.0 }
 0x1bd   :  { %v789_v57 = vpop.f32.mrf.mxu1 }
 0x1be   :  { %v444_v59 = vmax.f32 %v408_v55, 0.0  ;;  %v456_v63 = vpack.c.bf16 %v446_v56, %v445_v60  ;;  %v429_v3 = vadd.f32 %v789_v57, %v679_v21 }
 0x1bf   :  { %v420_v61 = vpop.f32.mrf.mxu1 }
 0x1c0   :  { %v455_v62 = vpack.c.bf16 %v444_v59, %v443_v58  ;;  %v421_v1 = vadd.f32 %v679_v21, %v420_v61  ;;  %v449_v9 = vmax.f32 %v429_v3, 0.0 }
 0x1c1   :  { %v790_v0 = vpop.f32.mrf.mxu1 }
 0x1c2   :  { %v432_v2 = vadd.f32 %v790_v0, %v679_v21  ;;  %815 = vmatprep.mubr.bf16.mxu0 %v455_v62  ;;  %v447_v7 = vmax.f32 %v421_v1, 0.0 }
 0x1c3   :  { %v423_v4 = vpop.f32.mrf.mxu1  ;;  %816 = vmatmul.mubr.bf16.gmra.mxu0 %v456_v63 }
 0x1c4   :  { %v424_v5 = vadd.f32 %v679_v21, %v423_v4  ;;  %v450_v6 = vmax.f32 %v432_v2, 0.0 }
 0x1c6   :  { %v448_v8 = vmax.f32 %v424_v5, 0.0  ;;  %v458_v11 = vpack.c.bf16 %v450_v6, %v449_v9 }
 0x1c8   :  { %v457_v10 = vpack.c.bf16 %v448_v8, %v447_v7 }
 0x1ca   :  { %819 = vmatprep.mubr.bf16.mxu0 %v457_v10 }
 0x1cb   :  { %820 = vmatmul.mubr.bf16.gmra.mxu0 %v458_v11 }
 0x273   :  { %v809_v13 = vpop.f32.mrf.mxu0 }
 0x274   :  { %v573_v14 = vadd.f32 %v809_v13, %v688_v12 }
 0x275   :  { %v564_v15 = vpop.f32.mrf.mxu0 }
 0x276   :  { %629 = vst [vmem:[#allocation5 + $0x10] sm:$0xff] %v573_v14  ;;  %v565_v16 = vadd.f32 %v688_v12, %v564_v15 }
 0x277   :  { %v810_v17 = vpop.f32.mrf.mxu0 }
 0x278   :  { %627 = vst [vmem:[#allocation5] sm:$0xff] %v565_v16  ;;  %v576_v18 = vadd.f32 %v810_v17, %v688_v12 }
 0x279   :  { %v567_v19 = vpop.f32.mrf.mxu0 }
 0x27a   :  { %630 = vst [vmem:[#allocation5 + $0x18] sm:$0xff] %v576_v18  ;;  %v568_v20 = vadd.f32 %v688_v12, %v567_v19 }
 0x27b   :  { %v813_v21 = vpop.f32.mrf.mxu0 }
 0x27c   :  { %628 = vst [vmem:[#allocation5 + $0x8] sm:$0xff] %v568_v20  ;;  %v589_v22 = vadd.f32 %v813_v21, %v688_v12 }
 0x27d   :  { %v580_v23 = vpop.f32.mrf.mxu0 }
 0x27e   :  { %633 = vst [vmem:[#allocation5 + $0x30] sm:$0xff] %v589_v22  ;;  %v581_v24 = vadd.f32 %v688_v12, %v580_v23 }
 0x27f   :  { %v814_v25 = vpop.f32.mrf.mxu0 }
 0x280   :  { %631 = vst [vmem:[#allocation5 + $0x20] sm:$0xff] %v581_v24  ;;  %v592_v26 = vadd.f32 %v814_v25, %v688_v12 }
 0x281   :  { %v583_v27 = vpop.f32.mrf.mxu0 }
 0x282   :  { %634 = vst [vmem:[#allocation5 + $0x38] sm:$0xff] %v592_v26  ;;  %v584_v28 = vadd.f32 %v688_v12, %v583_v27 }
 0x283   :  { %v817_v29 = vpop.f32.mrf.mxu0 }
 0x284   :  { %632 = vst [vmem:[#allocation5 + $0x28] sm:$0xff] %v584_v28  ;;  %v605_v30 = vadd.f32 %v817_v29, %v688_v12 }
 0x285   :  { %v596_v31 = vpop.f32.mrf.mxu0 }
 0x286   :  { %637 = vst [vmem:[#allocation5 + $0x50] sm:$0xff] %v605_v30  ;;  %v597_v32 = vadd.f32 %v688_v12, %v596_v31 }
 0x287   :  { %v818_v33 = vpop.f32.mrf.mxu0 }
 0x288   :  { %635 = vst [vmem:[#allocation5 + $0x40] sm:$0xff] %v597_v32  ;;  %v608_v34 = vadd.f32 %v818_v33, %v688_v12 }
 0x289   :  { %v599_v35 = vpop.f32.mrf.mxu0 }
 0x28a   :  { %638 = vst [vmem:[#allocation5 + $0x58] sm:$0xff] %v608_v34  ;;  %v600_v36 = vadd.f32 %v688_v12, %v599_v35 }
 0x28b   :  { %v821_v37 = vpop.f32.mrf.mxu0 }
 0x28c   :  { %636 = vst [vmem:[#allocation5 + $0x48] sm:$0xff] %v600_v36  ;;  %v621_v38 = vadd.f32 %v821_v37, %v688_v12 }
 0x28d   :  { %v612_v39 = vpop.f32.mrf.mxu0 }
 0x28e   :  { %641 = vst [vmem:[#allocation5 + $0x70] sm:$0xff] %v621_v38  ;;  %v613_v40 = vadd.f32 %v688_v12, %v612_v39 }
 0x28f   :  { %v822_v41 = vpop.f32.mrf.mxu0 }
 0x290   :  { %639 = vst [vmem:[#allocation5 + $0x60] sm:$0xff] %v613_v40  ;;  %v624_v42 = vadd.f32 %v822_v41, %v688_v12 }
 0x291   :  { %v615_v43 = vpop.f32.mrf.mxu0 }
 0x292   :  { %642 = vst [vmem:[#allocation5 + $0x78] sm:$0xff] %v624_v42  ;;  %v616_v44 = vadd.f32 %v688_v12, %v615_v43 }
 0x294   :  { %640 = vst [vmem:[#allocation5 + $0x68] sm:$0xff] %v616_v44 }
 0x295   :  { %886 = shalt.err (!%p883_p9)
}
 0x296   :  { %s903_s21 = smov 128   ;;  %s904_s22 = smov 8  }
 0x297   :  { %654 = dma.vmem_to_hbm [thread:$0]  %s649_s19, 2048, %s1029_s7, [#allocation4], %s903_s21, %s903_s21, %s904_s22  }
 0x298   :  { %897 = dma.done.wait [#allocation4], 2048  }
 0x299   :  { %898 = vsyncadd [#allocation4], 4294965248 }
 0x29a   :  { %658 = vsyncpa [#allocation3], 1 }
 0x29b   :  { %659 = vsyncpa [#allocation4], 1 }

</bundles_post_ra>
